<compile_context>
chip_gen: v7x
topology: tpu7x:2x2x1
jax: 0.10.0
libtpu: 0.0.40
codegen_flags: <defaults>
</compile_context>

<pallas_src>
import functools

import jax
import jax.numpy as jnp
import numpy as np
from jax.experimental import pallas as pl
from jax.experimental.pallas import tpu as pltpu

EPS = 1e-5
TM_CAP = 1024


def _round_up(x, m):
    return (x + m - 1) // m * m


def _pick_tm(m, k_cols, c_cols):
    """Largest M-row tile that keeps double-buffered tiles inside a 16 MiB budget."""
    per_row = 2 * (k_cols * 2) + 2 * (c_cols * 4)   # bf16 patch (x2 bufs) + f32 out (x2 bufs)
    tm = min(TM_CAP, (16 << 20) // max(per_row, 1))
    tm = max(8, (tm // 8) * 8)
    return min(tm, _round_up(m, 8))


# ---------------------------------------------------------------------------
# Pass 1: conv-as-matmul (bf16 MXU, f32 acc) + batch statistics.
# Emits only the folded per-channel [scale; shift] ([2, C]); the pre-BN
# activations are never written to HBM (recomputed in pass 2).
# ---------------------------------------------------------------------------
def _stats_kernel(xp_ref, w_ref, g_ref, b_ref,     # inputs
                  ss_ref,                          # output: [2, C] = [scale; shift]
                  sum_acc, sq_acc,                 # VMEM scratch accumulators
                  *, m_true):
    i = pl.program_id(0)
    last = pl.num_programs(0) - 1
    tm = xp_ref.shape[0]

    @pl.when(i == 0)
    def _():
        sum_acc[...] = jnp.zeros_like(sum_acc)
        sq_acc[...] = jnp.zeros_like(sq_acc)

    # Conv as matmul on im2col patches -> [TM, C] in f32 on the MXU.
    # (No conv bias: training-mode BN's mean subtraction cancels it exactly.)
    y = jnp.dot(xp_ref[...], w_ref[...], preferred_element_type=jnp.float32)

    @pl.when(i != last)
    def _():
        # Fast path: non-final tiles never contain padded rows.
        sum_acc[...] += jnp.sum(y, axis=0, keepdims=True)
        sq_acc[...] += jnp.sum(y * y, axis=0, keepdims=True)

    @pl.when(i == last)
    def _():
        if m_true % tm == 0:
            ym = y                                   # trace-time: no padded rows
        else:
            # Mask only the final partial tile; (tm,1) mask broadcast over C.
            row = i * tm + jax.lax.broadcasted_iota(jnp.int32, (tm, 1), 0)
            ym = jnp.where(row < m_true, y, 0.0)
        sum_acc[...] += jnp.sum(ym, axis=0, keepdims=True)
        sq_acc[...] += jnp.sum(ym * ym, axis=0, keepdims=True)

        # Fold BN (training mode, biased variance) + affine into scale/shift.
        # NOTE: E[y^2]-E[y]^2 in f32 with a clamp; conv output is ~zero-mean
        # (no bias), so cancellation is benign at these scales.
        inv_m = 1.0 / float(m_true)
        mean = sum_acc[...] * inv_m
        var = jnp.maximum(sq_acc[...] * inv_m - mean * mean, 0.0)
        scale = g_ref[...] * jax.lax.rsqrt(var + EPS)
        shift = b_ref[...] - mean * scale
        ss_ref[...] = jnp.concatenate([scale, shift], axis=0)      # [2, C]


# ---------------------------------------------------------------------------
# Pass 2: recompute the tile matmul, apply per-channel FMA + ReLU.
# Output carries only the real C channels (no lane padding streamed to HBM).
# ---------------------------------------------------------------------------
def _apply_kernel(xp_ref, w_ref, ss_ref, o_ref):
    y = jnp.dot(xp_ref[...], w_ref[...], preferred_element_type=jnp.float32)
    scale = ss_ref[0:1, :]
    shift = ss_ref[1:2, :]
    o_ref[...] = jnp.maximum(y * scale + shift, 0.0)


# ---------------------------------------------------------------------------
# Host-side glue
# ---------------------------------------------------------------------------
def im2col_reflect(x_nchw, kernel=3, stride=2, pad=1):
    """Reflect-pad + patch extraction.  Returns [M, Cin*k*k] (ci-major, ki, kj)."""
    n, cin, h, w = x_nchw.shape
    ho = (h + 2 * pad - kernel) // stride + 1
    wo = (w + 2 * pad - kernel) // stride + 1
    x = jnp.transpose(x_nchw, (0, 2, 3, 1))                     # NHWC
    xpad = jnp.pad(x, ((0, 0), (pad, pad), (pad, pad), (0, 0)), mode="reflect")
    cols = []
    for ki in range(kernel):
        for kj in range(kernel):
            sl = xpad[:, ki:ki + stride * (ho - 1) + 1:stride,
                         kj:kj + stride * (wo - 1) + 1:stride, :]   # [N,Ho,Wo,Cin]
            cols.append(sl)
    patch = jnp.stack(cols, axis=-1).reshape(n, ho, wo, cin * kernel * kernel)
    return patch.reshape(n * ho * wo, cin * kernel * kernel), (n, ho, wo)


def splitter_forward(x_nchw, params, kernel=3, stride=2, pad=1):
    """Returns (x_l, x_g) in NCHW, matching the PyTorch module (train-mode BN)."""
    # bf16 activations feed the MXU; reshuffling ops (im2col) are exact in bf16.
    patch, (n, ho, wo) = im2col_reflect(x_nchw.astype(jnp.bfloat16),
                                        kernel, stride, pad)
    m, kk = patch.shape

    wl, wg = params["wl"], params["wg"]
    cl, cg = wl.shape[1], wg.shape[1]
    c = cl + cg

    # Fuse both branches into one matmul / BN / ReLU (per-channel stats are
    # unaffected by column concatenation).
    w = jnp.concatenate([wl, wg], axis=1).astype(jnp.bfloat16)     # [K, C]
    gamma = jnp.concatenate([params["gl"], params["gg"]], axis=1)  # [1, C] f32
    beta = jnp.concatenate([params["betl"], params["betg"]], axis=1)

    tm = _pick_tm(m, kk, c)
    mp = _round_up(m, tm)
    num_tiles = mp // tm
    patch_p = patch if mp == m else jnp.pad(patch, ((0, mp - m), (0, 0)))

    f32 = jnp.float32

    # ---- pass 1: matmul + stats -> [2, C] scale/shift -----------------------
    vmem_p1 = int(2 * tm * kk * 2 + 2 * kk * c * 2 + 8 * 8 * 128 * 4) + (4 << 20)
    ss = pl.pallas_call(
        functools.partial(_stats_kernel, m_true=m),
        out_shape=jax.ShapeDtypeStruct((2, c), f32),
        grid=(num_tiles,),
        in_specs=[pl.BlockSpec((tm, kk), lambda i: (i, 0)),
                  pl.BlockSpec((kk, c), lambda i: (0, 0)),
                  pl.BlockSpec((1, c), lambda i: (0, 0)),
                  pl.BlockSpec((1, c), lambda i: (0, 0))],
        out_specs=pl.BlockSpec((2, c), lambda i: (0, 0)),
        scratch_shapes=[pltpu.VMEM((1, c), f32),
                        pltpu.VMEM((1, c), f32)],
        compiler_params=pltpu.CompilerParams(
            dimension_semantics=("arbitrary",),      # stats accumulate across tiles
            vmem_limit_bytes=vmem_p1),
        cost_estimate=pl.CostEstimate(
            flops=2 * mp * kk * c, transcendentals=0,
            bytes_accessed=2 * mp * kk + 2 * kk * c + 4 * 2 * c),
    )(patch_p, w, gamma, beta)

    # ---- pass 2: recompute matmul, FMA + ReLU --------------------------------
    vmem_p2 = int(2 * tm * kk * 2 + 2 * kk * c * 2 + 2 * tm * c * 4
                  + 2 * 8 * 128 * 4) + (4 << 20)
    y_act = pl.pallas_call(
        _apply_kernel,
        out_shape=jax.ShapeDtypeStruct((mp, c), f32),
        grid=(num_tiles,),
        in_specs=[pl.BlockSpec((tm, kk), lambda i: (i, 0)),
                  pl.BlockSpec((kk, c), lambda i: (0, 0)),
                  pl.BlockSpec((2, c), lambda i: (0, 0))],
        out_specs=pl.BlockSpec((tm, c), lambda i: (i, 0)),
        compiler_params=pltpu.CompilerParams(
            dimension_semantics=("parallel",),       # megacore-shard on v7x
            vmem_limit_bytes=vmem_p2),
        cost_estimate=pl.CostEstimate(
            flops=2 * mp * kk * c + 3 * mp * c, transcendentals=0,
            bytes_accessed=2 * mp * kk + 2 * kk * c + 4 * 2 * c + 4 * mp * c),
    )(patch_p, w, ss)

    y = y_act[:m].reshape(n, ho, wo, c)
    x_l = jnp.transpose(y[..., :cl], (0, 3, 1, 2))
    x_g = jnp.transpose(y[..., cl:], (0, 3, 1, 2))
    return x_l, x_g


# ---------------------------------------------------------------------------
# Params + pure-JAX f32 reference (reference keeps the conv bias)
# ---------------------------------------------------------------------------
def make_params(key, in_dim, out_dim, ratio_g, kernel=3):
    out_dim_g = int(out_dim * ratio_g)
    out_dim_l = out_dim - out_dim_g
    kk = in_dim * kernel * kernel
    ks = jax.random.split(key, 8)
    scale = 1.0 / np.sqrt(kk)

    def conv_w(k, cout):
        # torch layout [Cout, Cin, kh, kw] flattened (ci, ki, kj)-minor -> [K, Cout]
        w = jax.random.uniform(k, (cout, kk), jnp.float32, -scale, scale)
        return jnp.transpose(w, (1, 0))

    return {
        "wl": conv_w(ks[0], out_dim_l),
        "bl": jax.random.uniform(ks[1], (1, out_dim_l), jnp.float32, -scale, scale),
        "gl": jax.random.normal(ks[2], (1, out_dim_l), jnp.float32) * 0.1 + 1.0,
        "betl": jax.random.normal(ks[3], (1, out_dim_l), jnp.float32) * 0.1,
        "wg": conv_w(ks[4], out_dim_g),
        "bg": jax.random.uniform(ks[5], (1, out_dim_g), jnp.float32, -scale, scale),
        "gg": jax.random.normal(ks[6], (1, out_dim_g), jnp.float32) * 0.1 + 1.0,
        "betg": jax.random.normal(ks[7], (1, out_dim_g), jnp.float32) * 0.1,
    }


def reference_forward(x_nchw, params, kernel=3, stride=2, pad=1):
    """Pure-JAX f32 reference (same math as the PyTorch module, incl. conv bias)."""
    patch, (n, ho, wo) = im2col_reflect(x_nchw, kernel, stride, pad)

    def branch(w, b, g, bt):
        y = patch @ w + b
        mean = jnp.mean(y, axis=0, keepdims=True)
        var = jnp.mean(jnp.square(y - mean), axis=0, keepdims=True)
        y = (y - mean) * jax.lax.rsqrt(var + EPS) * g + bt
        y = jnp.maximum(y, 0.0)
        return jnp.transpose(y.reshape(n, ho, wo, w.shape[1]), (0, 3, 1, 2))

    return (branch(params["wl"], params["bl"], params["gl"], params["betl"]),
            branch(params["wg"], params["bg"], params["gg"], params["betg"]))


if __name__ == "__main__":
    key = jax.random.PRNGKey(0)
    k_x, k_p = jax.random.split(key)

    # Small shapes consistent with the module: in_dim=4, out_dim=8, ratio_g=0.5
    N, Cin, H, W = 2, 4, 16, 16
    in_dim, out_dim, ratio_g = Cin, 8, 0.5

    x = jax.random.normal(k_x, (N, Cin, H, W), jnp.float32)
    params = make_params(k_p, in_dim, out_dim, ratio_g)

    x_l, x_g = splitter_forward(x, params)
    jax.block_until_ready((x_l, x_g))

    # Sanity check against the pure-JAX f32 reference.  Tolerance reflects the
    # bf16 MXU inputs (f32 accumulation); expected error is ~1e-2.
    r_l, r_g = reference_forward(x, params)
    assert x_l.shape == (N, out_dim - int(out_dim * ratio_g), H // 2, W // 2)
    assert x_g.shape == (N, int(out_dim * ratio_g), H // 2, W // 2)
    np.testing.assert_allclose(np.asarray(x_l), np.asarray(r_l), atol=5e-2, rtol=5e-2)
    np.testing.assert_allclose(np.asarray(x_g), np.asarray(r_g), atol=5e-2, rtol=5e-2)

    print("KERNEL_OK")
</pallas_src>

<mosaic_0001>
module attributes {stable_mosaic.version = 11 : i64} {
  func.func @_stats_kernel(%arg0: i32, %arg1: memref<128x36xbf16, #tpu.memory_space<vmem>>, %arg2: memref<36x8xbf16, #tpu.memory_space<vmem>>, %arg3: memref<1x8xf32, #tpu.memory_space<vmem>>, %arg4: memref<1x8xf32, #tpu.memory_space<vmem>>, %arg5: memref<2x8xf32, #tpu.memory_space<vmem>>, %arg6: memref<1x8xf32, #tpu.memory_space<vmem>>, %arg7: memref<1x8xf32, #tpu.memory_space<vmem>>) attributes {dimension_semantics = [#tpu.dimension_semantics<arbitrary>], iteration_bounds = array<i64: 1>, scalar_prefetch = 0 : i64, scratch_operands = 2 : i64, tpu.core_type = #tpu.core_type<tc>, window_params = [{transform_indices = @transform_0, window_bounds = array<i64: 128, 36>}, {pipeline_mode = #tpu.pipeline_mode<synchronous>, transform_indices = @transform_1, window_bounds = array<i64: 36, 8>}, {pipeline_mode = #tpu.pipeline_mode<synchronous>, transform_indices = @transform_2, window_bounds = array<i64: 1, 8>}, {pipeline_mode = #tpu.pipeline_mode<synchronous>, transform_indices = @transform_3, window_bounds = array<i64: 1, 8>}, {pipeline_mode = #tpu.pipeline_mode<synchronous>, transform_indices = @transform_4, window_bounds = array<i64: 2, 8>}]} {
    %c0_i32 = arith.constant 0 : i32
    %0 = arith.cmpi eq, %arg0, %c0_i32 : i32
    %1 = arith.extui %0 : i1 to i32
    %c0_i32_0 = arith.constant 0 : i32
    %2 = arith.cmpi ne, %1, %c0_i32_0 : i32
    scf.if %2 {
      %cst_8 = arith.constant 0.000000e+00 : f32
      %12 = vector.broadcast %cst_8 : f32 to vector<1x8xf32>
      %c0_9 = arith.constant 0 : index
      %c0_10 = arith.constant 0 : index
      %13 = vector.load %arg6[%c0_9, %c0_10] : memref<1x8xf32, #tpu.memory_space<vmem>>, vector<1x8xf32>
      tpu.vector_store %arg6[%c0_9, %c0_10], %12 {strides = array<i32>} : memref<1x8xf32, #tpu.memory_space<vmem>>, vector<1x8xf32>,
      %cst_11 = arith.constant 0.000000e+00 : f32
      %14 = vector.broadcast %cst_11 : f32 to vector<1x8xf32>
      %c0_12 = arith.constant 0 : index
      %c0_13 = arith.constant 0 : index
      %15 = vector.load %arg7[%c0_12, %c0_13] : memref<1x8xf32, #tpu.memory_space<vmem>>, vector<1x8xf32>
      tpu.vector_store %arg7[%c0_12, %c0_13], %14 {strides = array<i32>} : memref<1x8xf32, #tpu.memory_space<vmem>>, vector<1x8xf32>,
    } else {
    }
    %c0 = arith.constant 0 : index
    %c0_1 = arith.constant 0 : index
    %3 = vector.load %arg1[%c0, %c0_1] : memref<128x36xbf16, #tpu.memory_space<vmem>>, vector<128x36xbf16>
    %c0_2 = arith.constant 0 : index
    %c0_3 = arith.constant 0 : index
    %4 = vector.load %arg2[%c0_2, %c0_3] : memref<36x8xbf16, #tpu.memory_space<vmem>>, vector<36x8xbf16>
    %cst = arith.constant dense<0.000000e+00> : vector<128x8xf32>
    %5 = tpu.matmul %3, %4, %cst {dimension_numbers = #tpu.dot_dimension_numbers<[1], [0], [0], [1], [0, 0, 1, 1], [], []>} : vector<128x36xbf16>, vector<36x8xbf16>, vector<128x8xf32> -> vector<128x8xf32>
    %c0_i32_4 = arith.constant 0 : i32
    %6 = arith.cmpi ne, %arg0, %c0_i32_4 : i32
    %7 = arith.extui %6 : i1 to i32
    %c0_i32_5 = arith.constant 0 : i32
    %8 = arith.cmpi ne, %7, %c0_i32_5 : i32
    scf.if %8 {
      %c0_8 = arith.constant 0 : index
      %c0_9 = arith.constant 0 : index
      %12 = vector.load %arg6[%c0_8, %c0_9] : memref<1x8xf32, #tpu.memory_space<vmem>>, vector<1x8xf32>
      %cst_10 = arith.constant dense<0.000000e+00> : vector<8xf32>
      %13 = vector.multi_reduction <add>, %5, %cst_10 [0] : vector<128x8xf32> to vector<8xf32>
      %14 = vector.shape_cast %13 : vector<8xf32> to vector<1x8xf32>
      %15 = arith.addf %12, %14 : vector<1x8xf32>
      %c0_11 = arith.constant 0 : index
      %c0_12 = arith.constant 0 : index
      %16 = vector.load %arg6[%c0_11, %c0_12] : memref<1x8xf32, #tpu.memory_space<vmem>>, vector<1x8xf32>
      tpu.vector_store %arg6[%c0_11, %c0_12], %15 {strides = array<i32>} : memref<1x8xf32, #tpu.memory_space<vmem>>, vector<1x8xf32>,
      %c0_13 = arith.constant 0 : index
      %c0_14 = arith.constant 0 : index
      %17 = vector.load %arg7[%c0_13, %c0_14] : memref<1x8xf32, #tpu.memory_space<vmem>>, vector<1x8xf32>
      %18 = arith.mulf %5, %5 : vector<128x8xf32>
      %cst_15 = arith.constant dense<0.000000e+00> : vector<8xf32>
      %19 = vector.multi_reduction <add>, %18, %cst_15 [0] : vector<128x8xf32> to vector<8xf32>
      %20 = vector.shape_cast %19 : vector<8xf32> to vector<1x8xf32>
      %21 = arith.addf %17, %20 : vector<1x8xf32>
      %c0_16 = arith.constant 0 : index
      %c0_17 = arith.constant 0 : index
      %22 = vector.load %arg7[%c0_16, %c0_17] : memref<1x8xf32, #tpu.memory_space<vmem>>, vector<1x8xf32>
      tpu.vector_store %arg7[%c0_16, %c0_17], %21 {strides = array<i32>} : memref<1x8xf32, #tpu.memory_space<vmem>>, vector<1x8xf32>,
    } else {
    }
    %c0_i32_6 = arith.constant 0 : i32
    %9 = arith.cmpi eq, %arg0, %c0_i32_6 : i32
    %10 = arith.extui %9 : i1 to i32
    %c0_i32_7 = arith.constant 0 : i32
    %11 = arith.cmpi ne, %10, %c0_i32_7 : i32
    scf.if %11 {
      %c0_8 = arith.constant 0 : index
      %c0_9 = arith.constant 0 : index
      %12 = vector.load %arg6[%c0_8, %c0_9] : memref<1x8xf32, #tpu.memory_space<vmem>>, vector<1x8xf32>
      %cst_10 = arith.constant dense<0.000000e+00> : vector<8xf32>
      %13 = vector.multi_reduction <add>, %5, %cst_10 [0] : vector<128x8xf32> to vector<8xf32>
      %14 = vector.shape_cast %13 : vector<8xf32> to vector<1x8xf32>
      %15 = arith.addf %12, %14 : vector<1x8xf32>
      %c0_11 = arith.constant 0 : index
      %c0_12 = arith.constant 0 : index
      %16 = vector.load %arg6[%c0_11, %c0_12] : memref<1x8xf32, #tpu.memory_space<vmem>>, vector<1x8xf32>
      tpu.vector_store %arg6[%c0_11, %c0_12], %15 {strides = array<i32>} : memref<1x8xf32, #tpu.memory_space<vmem>>, vector<1x8xf32>,
      %c0_13 = arith.constant 0 : index
      %c0_14 = arith.constant 0 : index
      %17 = vector.load %arg7[%c0_13, %c0_14] : memref<1x8xf32, #tpu.memory_space<vmem>>, vector<1x8xf32>
      %18 = arith.mulf %5, %5 : vector<128x8xf32>
      %cst_15 = arith.constant dense<0.000000e+00> : vector<8xf32>
      %19 = vector.multi_reduction <add>, %18, %cst_15 [0] : vector<128x8xf32> to vector<8xf32>
      %20 = vector.shape_cast %19 : vector<8xf32> to vector<1x8xf32>
      %21 = arith.addf %17, %20 : vector<1x8xf32>
      %c0_16 = arith.constant 0 : index
      %c0_17 = arith.constant 0 : index
      %22 = vector.load %arg7[%c0_16, %c0_17] : memref<1x8xf32, #tpu.memory_space<vmem>>, vector<1x8xf32>
      tpu.vector_store %arg7[%c0_16, %c0_17], %21 {strides = array<i32>} : memref<1x8xf32, #tpu.memory_space<vmem>>, vector<1x8xf32>,
      %c0_18 = arith.constant 0 : index
      %c0_19 = arith.constant 0 : index
      %23 = vector.load %arg6[%c0_18, %c0_19] : memref<1x8xf32, #tpu.memory_space<vmem>>, vector<1x8xf32>
      %cst_20 = arith.constant 7.812500e-03 : f32
      %24 = vector.broadcast %cst_20 : f32 to vector<1x8xf32>
      %25 = arith.mulf %23, %24 : vector<1x8xf32>
      %c0_21 = arith.constant 0 : index
      %c0_22 = arith.constant 0 : index
      %26 = vector.load %arg7[%c0_21, %c0_22] : memref<1x8xf32, #tpu.memory_space<vmem>>, vector<1x8xf32>
      %cst_23 = arith.constant 7.812500e-03 : f32
      %27 = vector.broadcast %cst_23 : f32 to vector<1x8xf32>
      %28 = arith.mulf %26, %27 : vector<1x8xf32>
      %29 = arith.mulf %25, %25 : vector<1x8xf32>
      %30 = arith.subf %28, %29 : vector<1x8xf32>
      %cst_24 = arith.constant 0.000000e+00 : f32
      %31 = vector.broadcast %cst_24 : f32 to vector<1x8xf32>
      %32 = arith.maximumf %30, %31 : vector<1x8xf32>
      %c0_25 = arith.constant 0 : index
      %c0_26 = arith.constant 0 : index
      %33 = vector.load %arg3[%c0_25, %c0_26] : memref<1x8xf32, #tpu.memory_space<vmem>>, vector<1x8xf32>
      %cst_27 = arith.constant 9.99999974E-6 : f32
      %34 = vector.broadcast %cst_27 : f32 to vector<1x8xf32>
      %35 = arith.addf %32, %34 : vector<1x8xf32>
      %36 = math.rsqrt %35 : vector<1x8xf32>
      %37 = arith.mulf %33, %36 : vector<1x8xf32>
      %c0_28 = arith.constant 0 : index
      %c0_29 = arith.constant 0 : index
      %38 = vector.load %arg4[%c0_28, %c0_29] : memref<1x8xf32, #tpu.memory_space<vmem>>, vector<1x8xf32>
      %39 = arith.mulf %25, %37 : vector<1x8xf32>
      %40 = arith.subf %38, %39 : vector<1x8xf32>
      %41 = tpu.concatenate %37, %40 in 0 : vector<1x8xf32>, vector<1x8xf32> -> vector<2x8xf32>
      %c0_30 = arith.constant 0 : index
      %c0_31 = arith.constant 0 : index
      %42 = vector.load %arg5[%c0_30, %c0_31] : memref<2x8xf32, #tpu.memory_space<vmem>>, vector<2x8xf32>
      tpu.vector_store %arg5[%c0_30, %c0_31], %41 {strides = array<i32>} : memref<2x8xf32, #tpu.memory_space<vmem>>, vector<2x8xf32>,
    } else {
    }
    return
  }
  func.func @transform_0(%arg0: i32) -> (i32, i32) {
    %c0_i32 = arith.constant 0 : i32
    %c0_i32_0 = arith.constant 0 : i32
    return %arg0, %c0_i32 : i32, i32
  }
  func.func @transform_1(%arg0: i32) -> (i32, i32) {
    %c0_i32 = arith.constant 0 : i32
    %c0_i32_0 = arith.constant 0 : i32
    %c0_i32_1 = arith.constant 0 : i32
    return %c0_i32, %c0_i32_0 : i32, i32
  }
  func.func @transform_2(%arg0: i32) -> (i32, i32) {
    %c0_i32 = arith.constant 0 : i32
    %c0_i32_0 = arith.constant 0 : i32
    %c0_i32_1 = arith.constant 0 : i32
    return %c0_i32, %c0_i32_0 : i32, i32
  }
  func.func @transform_3(%arg0: i32) -> (i32, i32) {
    %c0_i32 = arith.constant 0 : i32
    %c0_i32_0 = arith.constant 0 : i32
    %c0_i32_1 = arith.constant 0 : i32
    return %c0_i32, %c0_i32_0 : i32, i32
  }
  func.func @transform_4(%arg0: i32) -> (i32, i32) {
    %c0_i32 = arith.constant 0 : i32
    %c0_i32_0 = arith.constant 0 : i32
    %c0_i32_1 = arith.constant 0 : i32
    return %c0_i32, %c0_i32_0 : i32, i32
  }
}

</mosaic_0001>

<bundles_post_ra>
// kernel: tpu_custom_call.1
= control target key start
LH: loop header
LB: loop body
LE: loop exit
PB: predicated region body
PF: predicated region fallthrough
CT: control target
= control target key end

     0   :  { %vm102_vm0 = vcmask 293888   ;;  %vm127_vm1 = vcmask 1041408   ;;  %s700_s0 = inlined_call_operand.vmem [shape: bf16[128,36], index: 0, kind: input, shape index: {}]   ;;  %s701_s1 = inlined_call_operand.vmem [shape: bf16[36,8], index: 1, kind: input, shape index: {}]   ;;  %s702_s2 = inlined_call_operand.vmem [shape: f32[1,8], index: 2, kind: input, shape index: {}]   ;;  %s703_s3 = inlined_call_operand.vmem [shape: f32[1,8], index: 3, kind: input, shape index: {}]   ;;  %s704_s4 = inlined_call_operand.hbm [shape: f32[2,8], index: 4, kind: output, shape index: {}]  }
   0x1   :  { %v531_v0 = vld [vmem:[%s701_s1] sm:$0xff]   ;;  %v532_v1 = vld [vmem:[%s701_s1 + $0x8] sm:$0xff]   ;;  %v533_v2 = vld [vmem:[%s701_s1 + $0x10] ss:$0 sps:$4 sm:$0x33]  }
   0x2   :  { %499 = vmatprep.subr.bf16.mxu0 %v531_v0  ;;  %v534_v3 = vld [vmem:[%s700_s0] sm:$0xff]   ;;  %521 = vmatprep.subr.bf16.mxu1 %v531_v0  ;;  %v129_v5 = vsel %vm127_vm1, %v533_v2, 0  ;;  %v535_v6 = vld [vmem:[%s700_s0 + $0x8] sm:$0xff]  }
   0x3   :  { %500 = vmatpush3.bf16.msra.mxu0 %v531_v0  ;;  %524 = vmatpush3.bf16.msra.mxu1 %v531_v0  ;;  %v538_v4 = vld [vmem:[%s700_s0 + $0x20] sm:$0xff]   ;;  %v539_v7 = vld [vmem:[%s700_s0 + $0x28] sm:$0xff]  }
   0x4   :  { %501 = vmatprep.subr.bf16.mxu0 %v532_v1  ;;  %505 = vmatprep.mubr.msk.bf16.mxu0 %vm102_vm0, %v534_v3 }
   0x5   :  { %522 = vmatprep.subr.bf16.mxu1 %v532_v1  ;;  %513 = vmatprep.mubr.msk.bf16.mxu1 %vm102_vm0, %v538_v4 }
   0x7   :  { %502 = vmatpush3.bf16.msra.mxu0 %v532_v1  ;;  %525 = vmatpush3.bf16.msra.mxu1 %v532_v1 }
   0x8   :  { %527 = vmatprep.subr.msk.bf16.mxu0 %vm127_vm1, %v533_v2  ;;  %528 = vmatprep.subr.msk.bf16.mxu1 %vm127_vm1, %v533_v2 }
   0x9   :  { %9 = vsyncpa [#allocation5], 0  ;;  %v536_v8 = vld [vmem:[%s700_s0 + $0x10] sm:$0xff]   ;;  %v537_v10 = vld [vmem:[%s700_s0 + $0x18] sm:$0xff]   ;;  %vm23_vm2 = vcmask 57344   ;;  %v568_v12 = vmov 0.0  }
   0xa   :  { %v540_v9 = vld [vmem:[%s700_s0 + $0x30] sm:$0xff]   ;;  %v541_v11 = vld [vmem:[%s700_s0 + $0x38] sm:$0xff]   ;;  %24 = vst.msk [vmem:[#allocation2] sm:$0x1] %vm23_vm2, %v568_v12  ;;  %25 = vst.msk [vmem:[#allocation3] sm:$0x1] %vm23_vm2, %v568_v12 }
   0xb   :  { %504 = vmatpush3.bf16.msra.mxu0 %v129_v5  ;;  %526 = vmatpush3.bf16.msra.mxu1 %v129_v5  ;;  %vm334_vm3 = vcmask 64512   ;;  %s569_s13 = smov [#allocation4]   ;;  %vm451_vm4 = vcmask 1040384   ;;  %vm453_vm5 = vcmask 58368  }
   0xc   :  { %s461_s14 = sshll.u32 %s569_s13, 4  ;;  %s462_s14 = int_to_ptr.vmem [resolvable:$true] %s461_s14 }
   0xd   :  { %s544_s15 = scalar_lea.vmem %s462_s14, 32  ;;  %p549_p1 = scmp.lt.s32.totalorder %s462_s14, %s462_s14 }
   0xe   :  { %506 = vmatmul.mubr.msk.bf16.vlgmr.msra.gmra.mrb[0].mxu0 %vm102_vm0, %v535_v6  ;;  %514 = vmatmul.mubr.msk.bf16.vlgmr.msra.gmra.mrb[0].mxu1 %vm102_vm0, %v539_v7  ;;  %p545_p0 = scmp.ne.s32.totalorder %s462_s14, %s544_s15  ;;  %p550_p2 = scmp.lt.s32.totalorder %s544_s15, %s544_s15 }
   0xf   :  { %509 = vmatprep.mubr.msk.bf16.mxu0 %vm102_vm0, %v536_v8  ;;  %517 = vmatprep.mubr.msk.bf16.mxu1 %vm102_vm0, %v540_v9 }
  0x10   :  { %p551_p3 = por %p550_p2, %p549_p1 }
  0x12   :  { %p552_p4 = pnand %p551_p3, %p545_p0 }
  0x16   :  { %510 = vmatmul.mubr.msk.bf16.gmra.mrb[4].mxu0 %vm102_vm0, %v537_v10  ;;  %518 = vmatmul.mubr.msk.bf16.gmra.mrb[4].mxu1 %vm102_vm0, %v541_v11 }
  0xe1   :  { %v507_v13 = vpop.f32.mrb[0].mxu0  ;;  %v638_v14 = vpop.f32.mrb[0].mxu1 }
  0xe2   :  { %v165_v15 = vpop.f32.mrb[1].mxu0  ;;  %v197_v16 = vpop.f32.mrb[1].mxu1  ;;  %v378_v22 = vmul.f32 %v507_v13, %v507_v13  ;;  %v338_v27 = vsel %vm334_vm3, %v507_v13, 0.0  ;;  %v386_v8 = vmul.f32 %v638_v14, %v638_v14  ;;  %v354_v12 = vsel %vm334_vm3, %v638_v14, 0.0 }
  0xe3   :  { %v376_v17 = vmul.f32 %v165_v15, %v165_v15  ;;  %v508_v18 = vpop.f32.mrb[2].mxu0  ;;  %v640_v19 = vpop.f32.mrb[2].mxu1  ;;  %v335_v23 = vsel %vm334_vm3, %v165_v15, 0.0  ;;  %v384_v59 = vmul.f32 %v197_v16, %v197_v16  ;;  %v350_v0 = vsel %vm334_vm3, %v197_v16, 0.0 }
  0xe4   :  { %v168_v20 = vpop.f32.mrb[3].mxu0  ;;  %v200_v21 = vpop.f32.mrb[3].mxu1  ;;  %v379_v29 = vmul.f32 %v508_v18, %v508_v18  ;;  %v395_v33 = vsel %vm334_vm3, %v378_v22, 0.0  ;;  %v340_v34 = vsel %vm334_vm3, %v508_v18, 0.0  ;;  %v387_v13 = vmul.f32 %v640_v19, %v640_v19 }
  0xe5   :  { %v336_v24 = vsel %vm334_vm3, %v168_v20, 0.0  ;;  %v377_v25 = vmul.f32 %v168_v20, %v168_v20  ;;  %v392_v28 = vsel %vm334_vm3, %v376_v17, 0.0  ;;  %v407_v4 = vsel %vm334_vm3, %v384_v59, 0.0 }
  0xe6   :  { %v337_v26 = vadd.f32 %v336_v24, %v335_v23  ;;  %v397_v41 = vsel %vm334_vm3, %v379_v29, 0.0  ;;  %v385_v5 = vmul.f32 %v200_v21, %v200_v21  ;;  %v352_v9 = vsel %vm334_vm3, %v200_v21, 0.0 }
  0xe7   :  { %v393_v30 = vsel %vm334_vm3, %v377_v25, 0.0  ;;  %v411_v20 = vsel %vm334_vm3, %v386_v8, 0.0  ;;  %v356_v22 = vsel %vm334_vm3, %v640_v19, 0.0  ;;  %v413_v25 = vsel %vm334_vm3, %v387_v13, 0.0  ;;  %v442_v8 = vld [vmem:[%s703_s3] sm:$0x1] }
  0xe8   :  { %v339_v31 = vadd.f32 %v338_v27, %v337_v26  ;;  %v394_v32 = vadd.f32 %v393_v30, %v392_v28  ;;  %v409_v15 = vsel %vm334_vm3, %v385_v5, 0.0 }
  0xe9   :  { %v511_v35 = vpop.f32.mrb[4].mxu0  ;;  %v519_v36 = vpop.f32.mrb[4].mxu1 }
  0xea   :  { %v396_v37 = vadd.f32 %v395_v33, %v394_v32  ;;  %v181_v38 = vpop.f32.mrb[5].mxu0  ;;  %v341_v39 = vadd.f32 %v340_v34, %v339_v31  ;;  %v213_v40 = vpop.f32.mrb[5].mxu1  ;;  %v382_v50 = vmul.f32 %v511_v35, %v511_v35  ;;  %v346_v56 = vsel %vm334_vm3, %v511_v35, 0.0 }
  0xeb   :  { %v342_v42 = vsel %vm334_vm3, %v181_v38, 0.0  ;;  %v380_v43 = vmul.f32 %v181_v38, %v181_v38  ;;  %v512_v44 = vpop.f32.mrb[6].mxu0  ;;  %v520_v45 = vpop.f32.mrb[6].mxu1  ;;  %v388_v16 = vmul.f32 %v213_v40, %v213_v40  ;;  %v358_v21 = vsel %vm334_vm3, %v213_v40, 0.0 }
  0xec   :  { %v343_v46 = vadd.f32 %v342_v42, %v341_v39  ;;  %v398_v47 = vadd.f32 %v397_v41, %v396_v37  ;;  %v184_v48 = vpop.f32.mrb[7].mxu0  ;;  %v216_v49 = vpop.f32.mrb[7].mxu1  ;;  %v383_v57 = vmul.f32 %v512_v44, %v512_v44  ;;  %v403_v62 = vsel %vm334_vm3, %v382_v50, 0.0 }
  0xed   :  { %v399_v51 = vsel %vm334_vm3, %v380_v43, 0.0  ;;  %v344_v52 = vsel %vm334_vm3, %v184_v48, 0.0  ;;  %v381_v53 = vmul.f32 %v184_v48, %v184_v48  ;;  %v348_v63 = vsel %vm334_vm3, %v512_v44, 0.0 }
  0xee   :  { %v400_v54 = vadd.f32 %v399_v51, %v398_v47  ;;  %v345_v55 = vadd.f32 %v344_v52, %v343_v46  ;;  %v405_v3 = vsel %vm334_vm3, %v383_v57, 0.0  ;;  %v415_v14 = vsel %vm334_vm3, %v388_v16, 0.0 }
  0xef   :  { %v401_v58 = vsel %vm334_vm3, %v381_v53, 0.0  ;;  %v389_v26 = vmul.f32 %v216_v49, %v216_v49  ;;  %v390_v29 = vmul.f32 %v519_v36, %v519_v36  ;;  %v360_v30 = vsel %vm334_vm3, %v216_v49, 0.0  ;;  %v333_v53 = vld [vmem:[#allocation2] sm:$0x1] }
  0xf0   :  { %v347_v60 = vadd.f32 %v346_v56, %v345_v55  ;;  %v402_v61 = vadd.f32 %v401_v58, %v400_v54  ;;  %v362_v33 = vsel %vm334_vm3, %v519_v36, 0.0  ;;  %v391_v34 = vmul.f32 %v520_v45, %v520_v45  ;;  %v375_v56 = vld [vmem:[#allocation3] sm:$0x1] }
  0xf1   :  { %v417_v19 = vsel %vm334_vm3, %v389_v26, 0.0  ;;  %v419_v38 = vsel %vm334_vm3, %v390_v29, 0.0  ;;  %v364_v39 = vsel %vm334_vm3, %v520_v45, 0.0 }
  0xf2   :  { %v404_v1 = vadd.f32 %v403_v62, %v402_v61  ;;  %v349_v2 = vadd.f32 %v348_v63, %v347_v60  ;;  %v421_v42 = vsel %vm334_vm3, %v391_v34, 0.0 }
  0xf4   :  { %v351_v6 = vadd.f32 %v350_v0, %v349_v2  ;;  %v406_v7 = vadd.f32 %v405_v3, %v404_v1  ;;  %v446_v3 = vlaneseq }
  0xf6   :  { %v408_v10 = vadd.f32 %v407_v4, %v406_v7  ;;  %v353_v11 = vadd.f32 %v352_v9, %v351_v6  ;;  %v438_v4 = vld [vmem:[%s702_s2] sm:$0x1]  ;;  %v447_v5 = vshrl.u32 %v446_v3, 7 }
  0xf8   :  { %v355_v17 = vadd.f32 %v354_v12, %v353_v11  ;;  %v410_v18 = vadd.f32 %v409_v15, %v408_v10  ;;  %v448_v10 = vsub.s32 0, %v447_v5 }
  0xfa   :  { %v412_v23 = vadd.f32 %v411_v20, %v410_v18  ;;  %v357_v24 = vadd.f32 %v356_v22, %v355_v17 }
  0xfc   :  { %v359_v27 = vadd.f32 %v358_v21, %v357_v24  ;;  %v414_v28 = vadd.f32 %v413_v25, %v412_v23 }
  0xfe   :  { %v416_v31 = vadd.f32 %v415_v14, %v414_v28  ;;  %v361_v32 = vadd.f32 %v360_v30, %v359_v27 }
 0x100   :  { %v363_v35 = vadd.f32 %v362_v33, %v361_v32  ;;  %v418_v37 = vadd.f32 %v417_v19, %v416_v31 }
 0x102   :  { %v365_v40 = vadd.f32 %v364_v39, %v363_v35  ;;  %v420_v41 = vadd.f32 %v419_v38, %v418_v37 }
 0x104   :  { %v366_v43 = vrot.slane %v365_v40, 4  ;;  %v422_v44 = vadd.f32 %v421_v42, %v420_v41 }
 0x106   :  { %v367_v46 = vadd.f32 %v366_v43, %v365_v40  ;;  %v423_v47 = vrot.slane %v422_v44, 4 }
 0x108   :  { %v368_v48 = vrot.slane %v367_v46, 2  ;;  %v424_v49 = vadd.f32 %v423_v47, %v422_v44 }
 0x10a   :  { %v369_v36 = vadd.f32 %v368_v48, %v367_v46  ;;  %v425_v50 = vrot.slane %v424_v49, 2 }
 0x10c   :  { %v370_v51 = vrot.slane %v369_v36, 1  ;;  %v426_v52 = vadd.f32 %v425_v50, %v424_v49 }
 0x10e   :  { %v371_v54 = vadd.f32 %v370_v51, %v369_v36  ;;  %v427_v55 = vrot.slane %v426_v52, 1 }
 0x110   :  { %v372_v57 = vadd.f32 %v371_v54, %v333_v53  ;;  %v428_v45 = vadd.f32 %v427_v55, %v426_v52 }
 0x112   :  { %374 = vst.msk [vmem:[#allocation2] sm:$0x1] %vm23_vm2, %v372_v57  ;;  %v429_v58 = vadd.f32 %v428_v45, %v375_v56 }
 0x114   :  { %430 = vst.msk [vmem:[#allocation3] sm:$0x1] %vm23_vm2, %v429_v58 }
 0x119   :  { %v431_v59 = vld [vmem:[#allocation2] sm:$0x1] }
 0x11a   :  { %v432_v60 = vmul.f32 0.0078125, %v431_v59 }
 0x11b   :  { %v433_v61 = vld [vmem:[#allocation3] sm:$0x1] }
 0x11c   :  { %v434_v62 = vmul.f32 0.0078125, %v433_v61  ;;  %v435_v63 = vmul.f32 %v432_v60, %v432_v60 }
 0x11e   :  { %v436_v0 = vsub.f32 %v434_v62, %v435_v63 }
 0x120   :  { %v437_v1 = vmax.f32 %v436_v0, 0.0 }
 0x122   :  { %v439_v2 = vadd.f32 1e-05, %v437_v1 }
 0x124   :  { %542 = vrsqrt.f32 %v439_v2 }
 0x12e   :  { %v543_v6 = vpop.eup %542 }
 0x12f   :  { %v441_v7 = vmul.f32 %v543_v6, %v438_v4 }
 0x131   :  { %v443_v9 = vmul.f32 %v441_v7, %v432_v60 }
 0x133   :  { %v444_v11 = vsub.f32 %v442_v8, %v443_v9 }
 0x135   :  { %v449_v12 = vrot.slane %v444_v11, %v448_v10 }
 0x137   :  { %v452_v13 = vsel %vm451_vm4, %v441_v7, %v449_v12 }
 0x138   :  { %454 = vst.msk [vmem:[#allocation4] sm:$0x3] %vm453_vm5, %v452_v13 }
 0x139   :  { %555 = shalt.err (!%p552_p4)
}
 0x13a   :  { %s556_s16 = scalar_lea.hbm %s704_s4, 32 }
 0x13b   :  { %p557_p5 = scmp.ne.s32.totalorder %s704_s4, %s556_s16  ;;  %p560_p6 = scmp.lt.u32.totalorder %s556_s16, %s704_s4 }
 0x13d   :  { %p562_p7 = pnand %p560_p6, %p557_p5 }
 0x13f   :  { %565 = shalt.err (!%p562_p7)
}
 0x140   :  { %464 = dma.vmem_to_hbm [thread:$0]  %s462_s14, 32, %s704_s4, [#allocation5]  }
 0x141   :  { %566 = dma.done.wait [#allocation5], 32  }
 0x142   :  { %567 = vsyncadd [#allocation5], 4294967264 }
 0x143   :  { %468 = vsyncpa [#allocation5], 1 }

</bundles_post_ra>
